<compile_context>
chip_gen: v5e
topology: v5e:2x2
jax: 0.10.0
libtpu: 0.0.40
codegen_flags: <defaults>
</compile_context>

<pallas_src>
import functools

import jax
import jax.numpy as jnp
from jax import lax
from jax.experimental import pallas as pl
from jax.experimental.pallas import tpu as pltpu


def eca_kernel(w_ref, x_ref, o_ref, *scratch, k, conv_via_roll):
    """ECA for one (bt, C, HW) block.

    w_ref  : (k,) f32 Conv1d taps in SMEM.
    x_ref  : (bt, C, HW) input block (native dtype); channels on sublanes,
             spatial on lanes.
    o_ref  : (bt, C, HW) output block.
    scratch: optionally one (bt, C + 2*pad, 1) f32 VMEM buffer (only for the
             small-C fallback conv path).
    """
    bt, c, hw = x_ref.shape
    pad = (k - 1) // 2

    x = x_ref[...]
    # Adaptive average pool over the spatial (lane) axis, accumulated in f32.
    y = jnp.sum(x, axis=-1, keepdims=True, dtype=jnp.float32) * (1.0 / hw)  # (bt, C, 1)

    if pad == 0:
        yc = w_ref[0] * y
    elif conv_via_roll:
        # k-tap Conv1d over channels as 2*pad XLU rolls + VPU selects, all in
        # registers (no scratch store->load hazard, no masked sublane stores).
        # The weight for each rolled copy is selected from the rolled iota
        # offset, so the code is independent of the rotate-direction
        # convention; wrapped-around rows see |offset| = C - m > pad, select
        # no weight, and thereby implement the Conv1d zero padding.
        ci = lax.broadcasted_iota(jnp.int32, y.shape, 1)
        yc = w_ref[pad] * y
        for m in range(1, pad + 1):
            for amt in (m, c - m):                       # rotate both ways
                ry = pltpu.roll(y, amt, axis=1)
                off = pltpu.roll(ci, amt, axis=1) - ci   # true source offset
                wsel = jnp.where(off == m, w_ref[pad + m],
                                 jnp.where(off == -m, w_ref[pad - m], 0.0))
                yc = yc + wsel * ry
    else:
        # Tiny / non-8-multiple channel counts (demo: C=4): zero-padded VMEM
        # scratch + static pl.ds windows (proven lowering for these shapes).
        # Only the 2*pad edge rows are zeroed; the interior is overwritten
        # every step.
        (yp_ref,) = scratch
        zeros_edge = jnp.zeros((bt, pad, 1), jnp.float32)
        yp_ref[:, pl.ds(0, pad), :] = zeros_edge
        yp_ref[:, pl.ds(pad + c, pad), :] = zeros_edge
        yp_ref[:, pl.ds(pad, c), :] = y
        yc = w_ref[0] * yp_ref[:, pl.ds(0, c), :]
        for j in range(1, k):
            yc = yc + w_ref[j] * yp_ref[:, pl.ds(j, c), :]

    s = jax.nn.sigmoid(yc)                               # (bt, C, 1) f32
    # Multiply in f32, cast once: matches the reference exactly (no double
    # rounding for low-precision inputs); perf-neutral since HBM-bound.
    o_ref[...] = (x.astype(jnp.float32) * s).astype(o_ref.dtype)


def _chip_budget():
    """Returns (vmem_capacity_bytes, tensorcores_per_chip heuristic)."""
    try:
        vmem_cap = int(pltpu.get_tpu_info().vmem_capacity_bytes)
    except Exception:
        vmem_cap = 64 << 20                  # conservative: v7x per-core VMEM
    # TODO(synk): read the TensorCore count from TpuInfo once exposed; for now
    # infer it from per-core VMEM (v7x: 64 MiB & 2 cores, v5e/v6e: 128 MiB & 1).
    num_cores = 2 if vmem_cap <= (64 << 20) else 1
    return vmem_cap, num_cores


def _pick_batch_tile(batch, per_batch_bytes, target_bytes, min_steps):
    """Rows per block: as many as fit the byte target, shrunk so the grid has
    at least `min_steps` steps when the batch allows (never below 1 row)."""
    max_bt = max(1, min(batch, target_bytes // max(1, per_batch_bytes)))
    want_bt = max(1, -(-batch // max(1, min_steps)))     # cdiv(batch, min_steps)
    return min(max_bt, want_bt)


def eca_forward(x, weight):
    """x: (B, C, H, W); weight: (k,) Conv1d taps.  Returns (B, C, H, W)."""
    B, C, H, W = x.shape
    HW = H * W
    k = int(weight.shape[0])
    pad = (k - 1) // 2

    xr = x.reshape(B, C, HW)
    per_batch_bytes = C * HW * x.dtype.itemsize

    vmem_cap, num_cores = _chip_budget()
    # Pipeline residency ~= 2x input + 2x output buffers of one block; aim the
    # block at ~3/16 of VMEM (~12 MiB on v7x, ~24 MiB on v5e/v6e).
    target_block_bytes = max(4 << 20, (vmem_cap * 3) // 16)
    # >= 2 blocks per TensorCore on megacore chips so per-core double
    # buffering can hide the DMAs; on single-core chips take the largest block.
    min_steps = 4 if num_cores > 1 else 1
    bt = _pick_batch_tile(B, per_batch_bytes, target_block_bytes, min_steps)
    grid = (pl.cdiv(B, bt),)   # non-divisor tails OK: rows are independent

    block_bytes = bt * per_batch_bytes
    scoped_cap = min(100 << 20, vmem_cap - (12 << 20))   # headroom for compiler
    vmem_limit = int(min(scoped_cap, max(32 << 20, 4 * block_bytes + (2 << 20))))
    # TODO(synk): if a single image (C*HW) exceeds the block budget, split the
    # HW axis in a two-pass design (pass 1: per-(B,C) scales; pass 2: tiled
    # elementwise scale).

    conv_via_roll = (C % 8 == 0) and (C > 2 * pad)
    scratch_shapes = []
    if pad > 0 and not conv_via_roll:
        scratch_shapes = [pltpu.VMEM((bt, C + 2 * pad, 1), jnp.float32)]

    kernel = functools.partial(eca_kernel, k=k, conv_via_roll=conv_via_roll)

    out = pl.pallas_call(
        kernel,
        out_shape=jax.ShapeDtypeStruct((B, C, HW), x.dtype),
        grid_spec=pltpu.PrefetchScalarGridSpec(
            num_scalar_prefetch=0,
            grid=grid,
            in_specs=[
                pl.BlockSpec(memory_space=pltpu.MemorySpace.SMEM),  # (k,) taps
                pl.BlockSpec((bt, C, HW), lambda b: (b, 0, 0)),     # x block
            ],
            out_specs=pl.BlockSpec((bt, C, HW), lambda b: (b, 0, 0)),
            scratch_shapes=scratch_shapes,
        ),
        compiler_params=pltpu.CompilerParams(
            dimension_semantics=("parallel",),
            vmem_limit_bytes=vmem_limit,
        ),
    )(weight.astype(jnp.float32), xr)
    return out.reshape(B, C, H, W)


def eca_reference(x, weight):
    """Pure-JAX reference mirroring the PyTorch module."""
    k = weight.shape[0]
    pad = (k - 1) // 2
    y = jnp.mean(x.astype(jnp.float32), axis=(2, 3))          # (B, C)
    yp = jnp.pad(y, ((0, 0), (pad, pad)))                      # (B, C+2*pad)
    yc = sum(weight[j] * yp[:, j:j + y.shape[1]] for j in range(k))
    s = jax.nn.sigmoid(yc)[:, :, None, None]                   # (B, C, 1, 1)
    return (x.astype(jnp.float32) * s).astype(x.dtype)


if __name__ == "__main__":
    key = jax.random.PRNGKey(0)
    kx, kw = jax.random.split(key)

    B, C, H, W = 2, 4, 16, 16
    k_size = 3

    x = jax.random.normal(kx, (B, C, H, W), dtype=jnp.float32)
    # Conv1d weight (torch shape (1,1,k) -> (k,) taps), deterministic synthetic.
    weight = jax.random.uniform(kw, (k_size,), dtype=jnp.float32,
                                minval=-0.5, maxval=0.5)

    out = jax.block_until_ready(eca_forward(x, weight))
    ref = eca_reference(x, weight)

    assert out.shape == x.shape
    assert out.dtype == x.dtype
    assert jnp.allclose(out, ref, atol=1e-5, rtol=1e-5)

    print("KERNEL_OK")
</pallas_src>

<mosaic_0001>
module attributes {stable_mosaic.version = 11 : i64} {
  func.func @eca_kernel(%arg0: i32, %arg1: memref<3xf32, #tpu.memory_space<smem>>, %arg2: memref<1x4x256xf32, #tpu.memory_space<vmem>>, %arg3: memref<1x4x256xf32, #tpu.memory_space<vmem>>, %arg4: memref<1x6x1xf32, #tpu.memory_space<vmem>>) attributes {dimension_semantics = [#tpu.dimension_semantics<parallel>], iteration_bounds = array<i64: 2>, scalar_prefetch = 0 : i64, scratch_operands = 1 : i64, tpu.core_type = #tpu.core_type<tc>, window_params = [{transform_indices = @transform_0, window_bounds = array<i64: 3>}, {transform_indices = @transform_1, window_bounds = array<i64: 1, 4, 256>}, {transform_indices = @transform_2, window_bounds = array<i64: 1, 4, 256>}]} {
    %c0 = arith.constant 0 : index
    %c0_0 = arith.constant 0 : index
    %c0_1 = arith.constant 0 : index
    %0 = vector.load %arg2[%c0, %c0_0, %c0_1] : memref<1x4x256xf32, #tpu.memory_space<vmem>>, vector<1x4x256xf32>
    %cst = arith.constant dense<0.000000e+00> : vector<1x4xf32>
    %1 = vector.multi_reduction <add>, %0, %cst [2] : vector<1x4x256xf32> to vector<1x4xf32>
    %2 = vector.shape_cast %1 : vector<1x4xf32> to vector<1x4x1xf32>
    %cst_2 = arith.constant 3.906250e-03 : f32
    %3 = vector.broadcast %cst_2 : f32 to vector<1x4x1xf32>
    %4 = arith.mulf %2, %3 : vector<1x4x1xf32>
    %cst_3 = arith.constant 0.000000e+00 : f32
    %5 = vector.broadcast %cst_3 : f32 to vector<1x1x1xf32>
    %c0_4 = arith.constant 0 : index
    %c0_5 = arith.constant 0 : index
    %c0_6 = arith.constant 0 : index
    %6 = vector.load %arg4[%c0_4, %c0_5, %c0_6] : memref<1x6x1xf32, #tpu.memory_space<vmem>>, vector<1x1x1xf32>
    tpu.vector_store %arg4[%c0_4, %c0_5, %c0_6], %5 {strides = array<i32>} : memref<1x6x1xf32, #tpu.memory_space<vmem>>, vector<1x1x1xf32>,
    %c0_7 = arith.constant 0 : index
    %c5 = arith.constant 5 : index
    %c0_8 = arith.constant 0 : index
    %7 = vector.load %arg4[%c0_7, %c5, %c0_8] : memref<1x6x1xf32, #tpu.memory_space<vmem>>, vector<1x1x1xf32>
    tpu.vector_store %arg4[%c0_7, %c5, %c0_8], %5 {strides = array<i32>} : memref<1x6x1xf32, #tpu.memory_space<vmem>>, vector<1x1x1xf32>,
    %c0_9 = arith.constant 0 : index
    %c1 = arith.constant 1 : index
    %c0_10 = arith.constant 0 : index
    %8 = vector.load %arg4[%c0_9, %c1, %c0_10] : memref<1x6x1xf32, #tpu.memory_space<vmem>>, vector<1x4x1xf32>
    tpu.vector_store %arg4[%c0_9, %c1, %c0_10], %4 {strides = array<i32>} : memref<1x6x1xf32, #tpu.memory_space<vmem>>, vector<1x4x1xf32>,
    %c0_11 = arith.constant 0 : index
    %9 = memref.load %arg1[%c0_11] : memref<3xf32, #tpu.memory_space<smem>>
    %c0_12 = arith.constant 0 : index
    %c0_13 = arith.constant 0 : index
    %c0_14 = arith.constant 0 : index
    %10 = vector.load %arg4[%c0_12, %c0_13, %c0_14] : memref<1x6x1xf32, #tpu.memory_space<vmem>>, vector<1x4x1xf32>
    %11 = vector.broadcast %9 : f32 to vector<1x4x1xf32>
    %12 = arith.mulf %11, %10 : vector<1x4x1xf32>
    %c1_15 = arith.constant 1 : index
    %13 = memref.load %arg1[%c1_15] : memref<3xf32, #tpu.memory_space<smem>>
    %c0_16 = arith.constant 0 : index
    %c1_17 = arith.constant 1 : index
    %c0_18 = arith.constant 0 : index
    %14 = vector.load %arg4[%c0_16, %c1_17, %c0_18] : memref<1x6x1xf32, #tpu.memory_space<vmem>>, vector<1x4x1xf32>
    %15 = vector.broadcast %13 : f32 to vector<1x4x1xf32>
    %16 = arith.mulf %15, %14 : vector<1x4x1xf32>
    %17 = arith.addf %12, %16 : vector<1x4x1xf32>
    %c2 = arith.constant 2 : index
    %18 = memref.load %arg1[%c2] : memref<3xf32, #tpu.memory_space<smem>>
    %c0_19 = arith.constant 0 : index
    %c2_20 = arith.constant 2 : index
    %c0_21 = arith.constant 0 : index
    %19 = vector.load %arg4[%c0_19, %c2_20, %c0_21] : memref<1x6x1xf32, #tpu.memory_space<vmem>>, vector<1x4x1xf32>
    %20 = vector.broadcast %18 : f32 to vector<1x4x1xf32>
    %21 = arith.mulf %20, %19 : vector<1x4x1xf32>
    %22 = arith.addf %17, %21 : vector<1x4x1xf32>
    %23 = arith.negf %22 : vector<1x4x1xf32>
    %24 = math.exp %23 : vector<1x4x1xf32>
    %cst_22 = arith.constant 1.000000e+00 : f32
    %25 = vector.broadcast %cst_22 : f32 to vector<1x4x1xf32>
    %26 = arith.addf %25, %24 : vector<1x4x1xf32>
    %27 = arith.divf %25, %26 : vector<1x4x1xf32>
    %28 = vector.broadcast %27 : vector<1x4x1xf32> to vector<1x4x256xf32>
    %29 = arith.mulf %0, %28 : vector<1x4x256xf32>
    %c0_23 = arith.constant 0 : index
    %c0_24 = arith.constant 0 : index
    %c0_25 = arith.constant 0 : index
    %30 = vector.load %arg3[%c0_23, %c0_24, %c0_25] : memref<1x4x256xf32, #tpu.memory_space<vmem>>, vector<1x4x256xf32>
    tpu.vector_store %arg3[%c0_23, %c0_24, %c0_25], %29 {strides = array<i32>} : memref<1x4x256xf32, #tpu.memory_space<vmem>>, vector<1x4x256xf32>,
    return
  }
  func.func @transform_0(%arg0: i32) -> i32 {
    %c0_i32 = arith.constant 0 : i32
    %c0_i32_0 = arith.constant 0 : i32
    return %c0_i32 : i32
  }
  func.func @transform_1(%arg0: i32) -> (i32, i32, i32) {
    %c0_i32 = arith.constant 0 : i32
    %c0_i32_0 = arith.constant 0 : i32
    %c0_i32_1 = arith.constant 0 : i32
    return %arg0, %c0_i32, %c0_i32_0 : i32, i32, i32
  }
  func.func @transform_2(%arg0: i32) -> (i32, i32, i32) {
    %c0_i32 = arith.constant 0 : i32
    %c0_i32_0 = arith.constant 0 : i32
    %c0_i32_1 = arith.constant 0 : i32
    return %arg0, %c0_i32, %c0_i32_0 : i32, i32, i32
  }
}

</mosaic_0001>

<bundles_post_ra>
// kernel: tpu_custom_call.1
= control target key start
LH: loop header
LB: loop body
LE: loop exit
PB: predicated region body
PF: predicated region fallthrough
CT: control target
= control target key end

     0   :  { %7 = vsyncpa [#allocation6], 0  ;;  %s706_s0 = inlined_call_operand.hbm [shape: f32[3], index: 0, kind: input, shape index: {}]   ;;  %s707_s1 = inlined_call_operand.hbm [shape: f32[2,4,256], index: 1, kind: input, shape index: {}]   ;;  %s708_s2 = inlined_call_operand.hbm [shape: f32[2,4,256], index: 2, kind: output, shape index: {}]  }
   0x1   :  { %8 = vsyncpa [#allocation4], 0 }
   0x2   :  { %10 = vsyncpa [#allocation4 + $0x1], 0 }
   0x3   :  { %11 = vsyncpa [#allocation5], 0 }
   0x4   :  { %13 = vsyncpa [#allocation5 + $0x1], 0  ;;  %s560_s9 = smov 0   ;;  %s562_s10 = smov 0  }
   0x5   :  { %s564_s11 = smov 0   ;;  %s566_s12 = smov 0  }
   0x6 LB: > { %s581_s13 = sadd.s32 4294967295, %s539_s12   ;;  %s338_s14 = sadd.s32 4294967294, %s539_s12   ;;  %s539_s12 = sphi %s566_s12, %s718_s12   ;;  %s535_s11 = sphi %s564_s11, %s717_s11   ;;  %s531_s10 = sphi %s562_s10, %s716_s10   ;;  %s527_s9 = sphi %s560_s9, %s715_s9  }
   0x7   : > { %p60_p0 = scmp.ne.s32.totalorder %s531_s10, %s527_s9  ;;  %p61_p1 = scmp.eq.s32.totalorder %s581_s13, 0 }
   0x8   : > { %p84_p2 = scmp.eq.s32.totalorder %s581_s13, 1  ;;  %p90_p3 = scmp.eq.s32.totalorder %s338_s14, 1 }
   0x9   : > { %p590_p4 = por %p61_p1, %p60_p0  ;;  %p339_p5 = scmp.ge.s32.totalorder %s539_s12, 1 }
   0xa   : > { %p595_p6 = por %p90_p3, %p60_p0  ;;  %p97_p7 = scmp.lt.s32.totalorder %s539_s12, 3 }
   0xb   : > { %s109_s19 = sshll.u32 %s706_s0, 4  ;;  %s611_s21 = sadd.s32 1, %s539_s12   ;;  %s110_s19 = int_to_ptr.hbm [resolvable:$true] %s109_s19 }
   0xc   : > { %p603_p8 = pnand %p339_p5, %p97_p7  ;;  %s44_s22 = ssub.s32 %s539_s12, %s611_s21 }
   0xd   : > { %p45_p12 = scmp.eq.s32.totalorder %s44_s22, 0  ;;  %s47_s23 = sadd.s32 1, %s535_s11 }
   0xe   : > { %p367_p10 = pneg %p603_p8  ;;  %p54_p13 = scmp.ne.s32.totalorder %s535_s11, %s531_s10 }
   0xf   : > { %s541_s24 = smov [#allocation3]   ;;  %p55_p0 = scmp.eq.s32.totalorder %s539_s12, 0 }
  0x10   : > { %p368_p11 = pnand %p367_p10, %p61_p1  ;;  %p626_p3 = por %p84_p2, %p54_p13 }
  0x11   : > { %s621_s25 = scalar_select %p45_p12, %s535_s11, %s47_s23  }
  0x12   : > { %370 = dma.hbm_to_smem (!%p368_p11), %s110_s19, 16, %s541_s24, [#allocation6]  }
  0x13   : > { %s120_s27 = sand.u32 1, %s535_s11   ;;  %p56_p5 = por %p55_p0, %p54_p13 }
  0x14   : > { %p380_p7 = scmp.lt.s32.totalorder %s539_s12, 2  ;;  %s342_s28 = sshll.u32 %s120_s27, 3 }
  0x15   : > { %s357_s29 = sshll.u32 %s539_s12, 3  ;;  %s124_s6 = scalar_lea.vmem [#allocation7], %s342_s28 }
  0x16   : > { %s129_s4 = scalar_lea.hbm %s707_s1, %s357_s29  ;;  %s133_s7 = sshll.u32 %s124_s6, 4  ;;  %s134_s7 = int_to_ptr.vmem [resolvable:$true] %s133_s7 }
  0x17   : > { %s131_s5 = sshll.u32 %s129_s4, 4  ;;  %p636_p10 = pnand %p380_p7, %p56_p5  ;;  %s132_s5 = int_to_ptr.hbm [resolvable:$true] %s131_s5 }
  0x18   : > { %s121_s14 = scalar_lea.sflag [#allocation4], %s120_s27  ;;  %s439_s17 = sshra.s32 %s132_s5, 4  ;;  %s440_s17 = int_to_ptr.hbm [resolvable:$true] %s439_s17 }
  0x19   : > { %s441_s18 = scalar_lea.hbm %s440_s17, 8  ;;  %p443_p11 = pneg %p636_p10 }
  0x1a   : > { %p442_p2 = scmp.ne.s32.totalorder %s440_s17, %s441_s18  ;;  %s446_s23 = scalar_lea.hbm %s707_s1, 16 }
  0x1b   : > { %p447_p0 = scmp.lt.s32.totalorder %s440_s17, %s707_s1  ;;  %p448_p5 = scmp.lt.s32.totalorder %s446_s23, %s441_s18 }
  0x1c   : > { %p444_p12 = pnand %p443_p11, %p442_p2 }
  0x1d   : > { %p449_p7 = por %p448_p5, %p447_p0 }
  0x1e   : > { %p445_p13 = pneg %p444_p12 }
  0x20   : > { %p450_p9 = pnand %p449_p7, %p445_p13 }
  0x22   : > { %453 = shalt.err (!%p450_p9)
}
  0x23   : > { %374 = dma.hbm_to_vmem [thread:$0]  (!%p636_p10), %s132_s5, 128, %s134_s7, %s121_s14  }
  0x24   : > { %142 = sbr.rel (%p603_p8) target bundleno = 343 (0x157), region = 28 }
  0x29   : > { %514 = dma.done.wait (%p61_p1), [#allocation6], 16  }
  0x2a   : > { %516 = vsyncadd (%p61_p1), [#allocation6], 4294967280  ;;  %s657_s27 = sand.u32 1, %s531_s10  }
  0x2b   : > { %s347_s29 = sshll.u32 %s657_s27, 3  ;;  %s150_s30 = scalar_lea.sflag [#allocation4], %s657_s27 }
  0x2c   : > { %s153_s3 = scalar_lea.vmem [#allocation7], %s347_s29 }
  0x2d   : > { %518 = dma.done.wait (%p590_p4), %s150_s30, 128  }
  0x2e   : > { %520 = vsyncadd (%p590_p4), %s150_s30, 4294967168 }
  0x2f   : > { %159 = sfence }
  0x30   : > { %v667_v0 = vld [vmem:[%s153_s3] sm:$0xff]  ;;  %vm183_vm0 = vcmask 1043456   ;;  %vm190_vm1 = vcmask 0   ;;  %v542_v6 = vmov 0.0   ;;  %v543_v7 = vmov 0   ;;  %s195_s15 = sld [smem:[#allocation3]] }
  0x31   : > { %178 = vst [vmem:[#allocation1] ss:$2 sm:$0xff] %v667_v0  ;;  %419 = vset.pattern.permute.xlu0 %v543_v7  ;;  %vm193_vm2 = vcmask 3072   ;;  %s349_s20 = sld [smem:[#allocation3 + $0x1]]  ;;  %v544_v34 = vmov 839922192  }
  0x32   : > { %191 = vst.msk [vmem:[#allocation2] sm:$0x1] %vm190_vm1, %v542_v6  ;;  %s350_s4 = sld [smem:[#allocation3 + $0x2]]  ;;  %v233_v35 = vunpack.c.l.s4 %v544_v34  ;;  %s358_s5 = sshll.u32 %s581_s13, 3 }
  0x33   : > { %192 = vst.msk [vmem:[#allocation2 + $0x5] sm:$0x1] %vm190_vm1, %v542_v6  ;;  %s251_s8 = scalar_lea.hbm %s708_s2, %s358_s5  ;;  %s175_s14 = scalar_lea.vmem [#allocation8], %s347_s29 }
  0x34   : > { %v234_v36 = vunpack.c.0.s8 %v233_v35  ;;  %s253_s17 = sshll.u32 %s175_s14, 4  ;;  %s255_s18 = sshll.u32 %s251_s8, 4  ;;  %s254_s17 = int_to_ptr.vmem [resolvable:$true] %s253_s17  ;;  %s256_s18 = int_to_ptr.hbm [resolvable:$true] %s255_s18 }
  0x35   : > { %s240_s19 = scalar_lea.sflag [#allocation5], %s657_s27  ;;  %s483_s22 = sshra.s32 %s256_s18, 4  ;;  %s484_s22 = int_to_ptr.hbm [resolvable:$true] %s483_s22 }
  0x36   : > { %v197_v10 = vstv %s195_s15  ;;  %s485_s13 = scalar_lea.hbm %s484_s22, 8  ;;  %s489_s28 = scalar_lea.hbm %s708_s2, 16 }
  0x37   : > { %v201_v11 = vstv %s349_s20  ;;  %p486_p1 = scmp.ne.s32.totalorder %s484_s22, %s485_s13  ;;  %p490_p9 = scmp.lt.s32.totalorder %s484_s22, %s708_s2 }
  0x38   : > { %v179_v1 = vld.sshfl [vmem:[#allocation1] sm:$0xff pattern:$0x75316420]  ;;  %v180_v2 = vld.sshfl [vmem:[#allocation1 + $0x8] sm:$0xff pattern:$0x75316420]  ;;  %v206_v15 = vstv %s350_s4  ;;  %p491_p10 = scmp.lt.s32.totalorder %s489_s28, %s485_s13 }
  0x39   : > { %v184_v3 = vsel %vm183_vm0, %v179_v1, 0.0  ;;  %v185_v4 = vsel %vm183_vm0, %v180_v2, 0.0  ;;  %p487_p4 = pnand %p486_p1, %p626_p3 }
  0x3a   : > { %v186_v5 = vadd.f32 %v185_v4, %v184_v3  ;;  %p492_p2 = por %p491_p10, %p490_p9 }
  0x3b   : > { %p488_p8 = pneg %p487_p4 }
  0x3c   : > { %187 = vadd.xlane.f32.xlu0 %v186_v5 }
  0x3d   : > { %p493_p11 = pnand %p492_p2, %p488_p8 }
  0xaf   : > { %v188_v8 = vpop.xlane.xlu0 %187 }
  0xb0   : > { %v189_v9 = vmul.f32 0.00390625, %v188_v8 }
  0xb2   : > { %194 = vst.msk [vmem:[#allocation2 + $0x1] sm:$0xf] %vm193_vm2, %v189_v9 }
  0xb9   : > { %v196_v12 = vld [vmem:[#allocation2] sm:$0xf] }
  0xba   : > { %v200_v13 = vld [vmem:[#allocation2 + $0x1] sm:$0xf]  ;;  %v198_v16 = vmul.f32 %v197_v10, %v196_v12 }
  0xbb   : > { %v205_v14 = vld [vmem:[#allocation2 + $0x2] sm:$0xf]  ;;  %v202_v17 = vmul.f32 %v201_v11, %v200_v13 }
  0xbc   : > { %v207_v19 = vmul.f32 %v206_v15, %v205_v14 }
  0xbd   : > { %v203_v18 = vadd.f32 %v202_v17, %v198_v16 }
  0xbf   : > { %v208_v20 = vadd.f32 %v207_v19, %v203_v18 }
  0xc1   : > { %v351_v21 = vmul.f32 -1.442695, %v208_v20 }
  0xc3   : > { %420 = vpow2.f32 %v351_v21 }
  0xc9   : > { %v421_v22 = vpop.eup %420 }
  0xca   : > { %v212_v23 = vadd.f32 1.0, %v421_v22 }
  0xcc   : > { %422 = vrcp.f32 %v212_v23  ;;  %v224_v27 = vand.u32 2147483648, %v212_v23  ;;  %v222_v29 = vand.u32 2147483647, %v212_v23  ;;  %vm218_vm4 = vweird.f32 %v212_v23 }
  0xce   : > { %v225_v31 = vor.u32 1.1754944e-38, %v224_v27  ;;  %vm223_vm6 = vcmp.eq.f32.partialorder %v222_v29, 8.507059e+37 }
  0xd2   : > { %v423_v24 = vpop.eup %422 }
  0xd3   : > { %v214_v25 = vmul.f32 %v423_v24, %v212_v23  ;;  %vm219_vm3 = vweird.f32 %v423_v24 }
  0xd4   : > { %vm220_vm5 = vmor %vm218_vm4, %vm219_vm3 }
  0xd5   : > { %v215_v26 = vsub.f32 1.0, %v214_v25 }
  0xd7   : > { %v216_v28 = vmul.f32 %v423_v24, %v215_v26 }
  0xd9   : > { %v217_v30 = vadd.f32 %v423_v24, %v216_v28 }
  0xdb   : > { %v221_v32 = vsel %vm220_vm5, %v423_v24, %v217_v30 }
  0xdc   : > { %v226_v33 = vsel %vm223_vm6, %v225_v31, %v221_v32 }
  0xdd   : > { %230 = vperm.xlu0 %419, %v226_v33  }
 0x14f   : > { %v231_v37 = vpop.permute.xlu0 %230 }
 0x150   : > { %v235_v38 = vperm.slane %v231_v37, %v234_v36 }
 0x152   : > { %v237_v39 = vmul.f32 %v235_v38, %v667_v0 }
 0x154   : > { %238 = vst [vmem:[%s175_s14] sm:$0xff] %v237_v39 }
 0x155   : > { %496 = shalt.err (!%p493_p11)
}
 0x156   : > { %365 = dma.vmem_to_hbm [thread:$0]  (%p626_p3), %s254_s17, 128, %s256_s18, %s240_s19  }
 0x157 PF: > { %s267_s27 = sand.u32 1, %s527_s9   ;;  %p714_p12 = scmp.ge.s32.totalorder %s539_s12, 2 }
 0x158   : > { %s268_s3 = scalar_lea.sflag [#allocation5], %s267_s27 }
 0x159   : > { %p376_p13 = pnand %p714_p12, %p595_p6 }
 0x15b   : > { %p377_p0 = pneg %p376_p13 }
 0x15d   : > { %522 = dma.done.wait (%p377_p0), %s268_s3, 128  }
 0x15e   : > { %524 = vsyncadd (%p377_p0), %s268_s3, 4294967168  ;;  %p16_p5 = scmp.ge.s32.totalorder %s611_s21, 4   ;;  %s715_s9 = smov %s531_s10 }
 0x15f   : > { %s716_s10 = smov %s535_s11  ;;  %s717_s11 = smov %s621_s25 }
 0x160   : > { %s718_s12 = smov %s611_s21  ;;  %18 = sbr.rel (!%p16_p5) target bundleno = 6 (0x6), region = 78 }
 0x165   :  { %274 = vsyncpa [#allocation4], 1 }
 0x166   :  { %276 = vsyncpa [#allocation4 + $0x1], 1 }
 0x167   :  { %277 = vsyncpa [#allocation5], 1 }
 0x168   :  { %279 = vsyncpa [#allocation5 + $0x1], 1 }
 0x169   :  { %280 = vsyncpa [#allocation6], 1 }
 0x16a   :  { %282 = vsyncpa [#allocation6 + $0x1], 1 }

</bundles_post_ra>
